<compile_context>
chip_gen: v7x
topology: tpu7x:2x2x1
jax: 0.10.0
libtpu: 0.0.40
codegen_flags: <defaults>
</compile_context>

<pallas_src>
import functools

import jax
import jax.numpy as jnp
from jax.experimental import pallas as pl
from jax.experimental.pallas import tpu as pltpu


def _round_up(x, m):
    return (x + m - 1) // m * m


def _cdiv(a, b):
    return -(-a // b)


# ---------------------------------------------------------------------------
# Kernels
# ---------------------------------------------------------------------------
def _mlp_kernel_f32out(x_ref, w_ref, b_ref, o_ref):
    """f32 output: accumulate directly into the VMEM-resident output block."""
    k = pl.program_id(2)

    @pl.when(k == 0)
    def _init():
        o_ref[...] = jnp.zeros_like(o_ref)

    # x_ref: (tm, tk), w_ref: (tk, tn) pre-transposed -> plain MXU matmul.
    o_ref[...] += jnp.dot(x_ref[...], w_ref[...],
                          preferred_element_type=jnp.float32)

    @pl.when(k == pl.num_programs(2) - 1)
    def _epilogue():
        y = o_ref[...] + b_ref[...]                 # (1, tn) broadcasts over rows
        o_ref[...] = jnp.maximum(y, 0.01 * y)       # exact LeakyReLU for slope < 1


def _mlp_kernel_acc(x_ref, w_ref, b_ref, o_ref, acc_ref):
    """Non-f32 output: f32 scratch accumulator, cast on the final K step."""
    k = pl.program_id(2)

    @pl.when(k == 0)
    def _init():
        acc_ref[...] = jnp.zeros_like(acc_ref)

    acc_ref[...] += jnp.dot(x_ref[...], w_ref[...],
                            preferred_element_type=jnp.float32)

    @pl.when(k == pl.num_programs(2) - 1)
    def _epilogue():
        y = acc_ref[...] + b_ref[...]
        o_ref[...] = jnp.maximum(y, 0.01 * y).astype(o_ref.dtype)


# ---------------------------------------------------------------------------
# One-time parameter preparation (load time, out of the per-call hot path)
# ---------------------------------------------------------------------------
def prepare_params(w, b, *, tn=512, tk=1024, operand_dtype=None):
    """Cast, pre-transpose and pad the Linear parameters once.

    w: (out_dim, in_dim) PyTorch nn.Linear layout, b: (out_dim,)
    operand_dtype: e.g. jnp.bfloat16 (fine on v5e/v6e/v7x; accumulation stays f32).
    Returns (w_t_padded (Kp, Np), b_padded (1, Np), meta=(N, K, tn, tk)).
    """
    N, K = w.shape
    assert b.shape == (N,)
    tn = int(min(tn, _round_up(N, 128)))
    tk = int(min(tk, _round_up(K, 128)))
    Np = _round_up(N, tn)
    Kp = _round_up(K, tk)

    wc = w if operand_dtype is None else w.astype(operand_dtype)
    # Pre-transpose once: x @ w_t == x @ w.T, so the kernel needs no in-kernel
    # transpose (no per-step vxpose on the weight tile on any generation).
    w_t = jnp.pad(wc.T, ((0, Kp - K), (0, Np - N)))          # (Kp, Np)
    b_p = jnp.pad(b.astype(jnp.float32), (0, Np - N)).reshape(1, Np)
    return w_t, b_p, (int(N), int(K), tn, tk)


# ---------------------------------------------------------------------------
# Forward (hot path: only x is cast/padded here)
# ---------------------------------------------------------------------------
@functools.partial(
    jax.jit,
    static_argnames=("meta", "tm_max", "operand_dtype", "out_dtype"))
def simple_mlp_forward(x, w_t, b_p, *, meta, tm_max=1024,
                       operand_dtype=None, out_dtype=jnp.float32):
    """LeakyReLU(x @ w.T + b, slope=0.01) with pre-prepared params."""
    N, K, tn, tk = meta
    B, Kx = x.shape
    assert Kx == K, "input feature dim mismatch"
    Kp, Np = w_t.shape

    op_dtype = jnp.dtype(operand_dtype) if operand_dtype is not None else jnp.dtype(x.dtype)
    out_dtype = jnp.dtype(out_dtype)
    # Packed sublane multiple: f32 -> 8, bf16 -> 16, int8/fp8 -> 32.
    sub = {4: 8, 2: 16, 1: 32}[op_dtype.itemsize]

    # Batch tiling: stream the weight as few times as possible (weight HBM
    # traffic scales with Bp/tm), then rebalance tm so the last i-tile is not
    # mostly padding on awkward batch sizes.
    B_aligned = _round_up(B, sub)
    tm = min(tm_max, B_aligned)
    n_i = _cdiv(B_aligned, tm)
    tm = _round_up(_cdiv(B_aligned, n_i), sub)
    Bp = n_i * tm

    xc = x if operand_dtype is None else x.astype(operand_dtype)
    xp = jnp.pad(xc, ((0, Bp - B), (0, Kp - K)))   # zero K-padding is exact

    grid = (Bp // tm, Np // tn, Kp // tk)

    use_scratch = out_dtype != jnp.dtype(jnp.float32)
    kernel = _mlp_kernel_acc if use_scratch else _mlp_kernel_f32out
    scratch = [pltpu.VMEM((tm, tn), jnp.float32)] if use_scratch else []

    # VMEM budget: double-buffered x / w / out tiles (+ optional f32 scratch).
    # Cap at 48 MiB so large-tile configs still fit v7x's 64 MiB per-TC VMEM.
    vmem_bytes = 2 * (tm * tk * op_dtype.itemsize
                      + tk * tn * op_dtype.itemsize
                      + tm * tn * out_dtype.itemsize) + 2 * tn * 4
    if use_scratch:
        vmem_bytes += tm * tn * 4
    vmem_limit = min(max(vmem_bytes + (8 << 20), 32 << 20), 48 << 20)

    cost = pl.CostEstimate(
        flops=2 * B * N * K + 2 * B * N,
        transcendentals=0,
        bytes_accessed=(B * K * op_dtype.itemsize
                        + K * N * op_dtype.itemsize
                        + N * 4
                        + B * N * out_dtype.itemsize),
    )

    out = pl.pallas_call(
        kernel,
        out_shape=jax.ShapeDtypeStruct((Bp, Np), out_dtype),
        grid_spec=pltpu.PrefetchScalarGridSpec(
            num_scalar_prefetch=0,
            grid=grid,
            in_specs=[
                pl.BlockSpec((tm, tk), lambda i, j, k: (i, k)),   # x tile
                pl.BlockSpec((tk, tn), lambda i, j, k: (k, j)),   # w tile (pre-transposed)
                pl.BlockSpec((1, tn), lambda i, j, k: (0, j)),    # bias tile
            ],
            out_specs=pl.BlockSpec((tm, tn), lambda i, j, k: (i, j)),
            scratch_shapes=scratch,
        ),
        compiler_params=pltpu.CompilerParams(
            dimension_semantics=("parallel", "parallel", "arbitrary"),
            vmem_limit_bytes=int(vmem_limit),
        ),
        cost_estimate=cost,
    )(xp, w_t, b_p)

    return out[:B, :N]


def _reference(x, w, b):
    y = x @ w.T + b
    return jnp.where(y >= 0, y, 0.01 * y)


if __name__ == "__main__":
    key = jax.random.PRNGKey(0)
    kx, kw, kb = jax.random.split(key, 3)

    batch = 8
    input_dim = 32
    output_dim = 16

    # Deterministic params (mimic PyTorch Linear init: U(-1/sqrt(in), 1/sqrt(in))).
    bound = 1.0 / (input_dim ** 0.5)
    w = jax.random.uniform(kw, (output_dim, input_dim), jnp.float32, -bound, bound)
    b = jax.random.uniform(kb, (output_dim,), jnp.float32, -bound, bound)
    x = jax.random.normal(kx, (batch, input_dim), jnp.float32)

    # One-time parameter prep (out of the per-call hot path).
    w_t, b_p, meta = prepare_params(w, b)

    out = simple_mlp_forward(x, w_t, b_p, meta=meta)
    out = jax.block_until_ready(out)

    ref = _reference(x, w, b)
    assert out.shape == (batch, output_dim)
    assert jnp.allclose(out, ref, atol=1e-5, rtol=1e-5), "mismatch vs reference"

    print("KERNEL_OK")
</pallas_src>

<mosaic_0001>
module attributes {stable_mosaic.version = 11 : i64} {
  func.func @_mlp_kernel_f32out(%arg0: i32, %arg1: i32, %arg2: i32, %arg3: memref<8x128xf32, #tpu.memory_space<vmem>>, %arg4: memref<128x128xf32, #tpu.memory_space<vmem>>, %arg5: memref<1x128xf32, #tpu.memory_space<vmem>>, %arg6: memref<8x128xf32, #tpu.memory_space<vmem>>) attributes {dimension_semantics = [#tpu.dimension_semantics<parallel>, #tpu.dimension_semantics<parallel>, #tpu.dimension_semantics<arbitrary>], iteration_bounds = array<i64: 1, 1, 1>, scalar_prefetch = 0 : i64, scratch_operands = 0 : i64, tpu.core_type = #tpu.core_type<tc>, window_params = [{transform_indices = @transform_0, window_bounds = array<i64: 8, 128>}, {transform_indices = @transform_1, window_bounds = array<i64: 128, 128>}, {transform_indices = @transform_2, window_bounds = array<i64: 1, 128>}, {transform_indices = @transform_3, window_bounds = array<i64: 8, 128>}]} {
    %c0_i32 = arith.constant 0 : i32
    %0 = arith.cmpi eq, %arg2, %c0_i32 : i32
    %1 = arith.extui %0 : i1 to i32
    %c0_i32_0 = arith.constant 0 : i32
    %2 = arith.cmpi ne, %1, %c0_i32_0 : i32
    scf.if %2 {
      %cst_10 = arith.constant 0.000000e+00 : f32
      %12 = vector.broadcast %cst_10 : f32 to vector<8x128xf32>
      %c0_11 = arith.constant 0 : index
      %c0_12 = arith.constant 0 : index
      %13 = vector.load %arg6[%c0_11, %c0_12] : memref<8x128xf32, #tpu.memory_space<vmem>>, vector<8x128xf32>
      tpu.vector_store %arg6[%c0_11, %c0_12], %12 {strides = array<i32>} : memref<8x128xf32, #tpu.memory_space<vmem>>, vector<8x128xf32>,
    } else {
    }
    %c0 = arith.constant 0 : index
    %c0_1 = arith.constant 0 : index
    %3 = vector.load %arg6[%c0, %c0_1] : memref<8x128xf32, #tpu.memory_space<vmem>>, vector<8x128xf32>
    %c0_2 = arith.constant 0 : index
    %c0_3 = arith.constant 0 : index
    %4 = vector.load %arg3[%c0_2, %c0_3] : memref<8x128xf32, #tpu.memory_space<vmem>>, vector<8x128xf32>
    %c0_4 = arith.constant 0 : index
    %c0_5 = arith.constant 0 : index
    %5 = vector.load %arg4[%c0_4, %c0_5] : memref<128x128xf32, #tpu.memory_space<vmem>>, vector<128x128xf32>
    %cst = arith.constant dense<0.000000e+00> : vector<8x128xf32>
    %6 = tpu.matmul %4, %5, %cst {dimension_numbers = #tpu.dot_dimension_numbers<[1], [0], [0], [1], [0, 0, 1, 1], [], []>} : vector<8x128xf32>, vector<128x128xf32>, vector<8x128xf32> -> vector<8x128xf32>
    %7 = arith.addf %3, %6 : vector<8x128xf32>
    %c0_6 = arith.constant 0 : index
    %c0_7 = arith.constant 0 : index
    %8 = vector.load %arg6[%c0_6, %c0_7] : memref<8x128xf32, #tpu.memory_space<vmem>>, vector<8x128xf32>
    tpu.vector_store %arg6[%c0_6, %c0_7], %7 {strides = array<i32>} : memref<8x128xf32, #tpu.memory_space<vmem>>, vector<8x128xf32>,
    %c0_i32_8 = arith.constant 0 : i32
    %9 = arith.cmpi eq, %arg2, %c0_i32_8 : i32
    %10 = arith.extui %9 : i1 to i32
    %c0_i32_9 = arith.constant 0 : i32
    %11 = arith.cmpi ne, %10, %c0_i32_9 : i32
    scf.if %11 {
      %c0_10 = arith.constant 0 : index
      %c0_11 = arith.constant 0 : index
      %12 = vector.load %arg6[%c0_10, %c0_11] : memref<8x128xf32, #tpu.memory_space<vmem>>, vector<8x128xf32>
      %c0_12 = arith.constant 0 : index
      %c0_13 = arith.constant 0 : index
      %13 = vector.load %arg5[%c0_12, %c0_13] : memref<1x128xf32, #tpu.memory_space<vmem>>, vector<1x128xf32>
      %14 = vector.broadcast %13 : vector<1x128xf32> to vector<8x128xf32>
      %15 = arith.addf %12, %14 : vector<8x128xf32>
      %cst_14 = arith.constant 0.00999999977 : f32
      %16 = vector.broadcast %cst_14 : f32 to vector<8x128xf32>
      %17 = arith.mulf %16, %15 : vector<8x128xf32>
      %18 = arith.maximumf %15, %17 : vector<8x128xf32>
      %c0_15 = arith.constant 0 : index
      %c0_16 = arith.constant 0 : index
      %19 = vector.load %arg6[%c0_15, %c0_16] : memref<8x128xf32, #tpu.memory_space<vmem>>, vector<8x128xf32>
      tpu.vector_store %arg6[%c0_15, %c0_16], %18 {strides = array<i32>} : memref<8x128xf32, #tpu.memory_space<vmem>>, vector<8x128xf32>,
    } else {
    }
    return
  }
  func.func @transform_0(%arg0: i32, %arg1: i32, %arg2: i32) -> (i32, i32) {
    %c0_i32 = arith.constant 0 : i32
    return %arg0, %arg2 : i32, i32
  }
  func.func @transform_1(%arg0: i32, %arg1: i32, %arg2: i32) -> (i32, i32) {
    %c0_i32 = arith.constant 0 : i32
    return %arg2, %arg1 : i32, i32
  }
  func.func @transform_2(%arg0: i32, %arg1: i32, %arg2: i32) -> (i32, i32) {
    %c0_i32 = arith.constant 0 : i32
    %c0_i32_0 = arith.constant 0 : i32
    return %c0_i32, %arg1 : i32, i32
  }
  func.func @transform_3(%arg0: i32, %arg1: i32, %arg2: i32) -> (i32, i32) {
    %c0_i32 = arith.constant 0 : i32
    return %arg0, %arg1 : i32, i32
  }
}

</mosaic_0001>

<bundles_post_ra>
// kernel: simple_mlp_forward.1
= control target key start
LH: loop header
LB: loop body
LE: loop exit
PB: predicated region body
PF: predicated region fallthrough
CT: control target
= control target key end

     0   :  { %8 = vsyncpa [#allocation3], 0  ;;  %s343_s0 = inlined_call_operand.vmem [shape: f32[8,128], index: 0, kind: input, shape index: {}]   ;;  %s344_s1 = inlined_call_operand.hbm [shape: f32[128,128], index: 1, kind: input, shape index: {}]   ;;  %s345_s2 = inlined_call_operand.vmem [shape: f32[1,128], index: 2, kind: input, shape index: {}]   ;;  %s346_s3 = inlined_call_operand.hbm [shape: f32[8,128], index: 3, kind: output, shape index: {}]  }
   0x1   :  { %9 = vsyncpa [#allocation4], 0  ;;  %s286_s12 = smov [#allocation2]   ;;  %s238_s16 = scalar_lea.hbm %s344_s1, 2048 }
   0x2   :  { %s17_s13 = sshll.u32 %s286_s12, 4  ;;  %p239_p0 = scmp.ne.s32.totalorder %s344_s1, %s238_s16  ;;  %s18_s13 = int_to_ptr.vmem [resolvable:$true] %s17_s13 }
   0x3   :  { %p242_p1 = scmp.lt.u32.totalorder %s238_s16, %s344_s1 }
   0x5   :  { %p244_p2 = pnand %p242_p1, %p239_p0 }
   0x7   :  { %247 = shalt.err (!%p244_p2)
}
   0x8   :  { %s248_s21 = scalar_lea.vmem %s18_s13, 2048  ;;  %p253_p4 = scmp.lt.s32.totalorder %s18_s13, %s18_s13 }
   0x9   :  { %p249_p3 = scmp.ne.s32.totalorder %s18_s13, %s248_s21  ;;  %p254_p5 = scmp.lt.s32.totalorder %s248_s21, %s248_s21 }
   0xb   :  { %p255_p6 = por %p254_p5, %p253_p4 }
   0xd   :  { %p256_p7 = pnand %p255_p6, %p249_p3 }
   0xf   :  { %259 = shalt.err (!%p256_p7)
}
  0x10   :  { %s287_s22 = smov 128   ;;  %s288_s23 = smov 8  }
  0x11   :  { %23 = dma.hbm_to_vmem [thread:$0]  %s344_s1, 2048, %s18_s13, [#allocation3], %s287_s22, %s287_s22, %s288_s23  }
  0x12   :  { %282 = dma.done.wait [#allocation3], 2048  }
  0x13   :  { %283 = vsyncadd [#allocation3], 4294965248  ;;  %v289_v0 = vmov 0.0|0.0   ;;  %vm290_vm0 = vmmov 0   ;;  %v291_v1 = vmov 0.0   ;;  %v36_v2 = vld [vmem:[#allocation2] sm:$0xff] }
  0x14   :  { %207 = vmatprep.subr.bf16.mxu0 %v289_v0  ;;  %204 = vmatprep.mubr.msk.f32.mxu0 %vm290_vm0, %v291_v1  ;;  %v37_v3 = vld [vmem:[#allocation2 + $0x8] sm:$0xff]  ;;  %v38_v4 = vld [vmem:[#allocation2 + $0x10] sm:$0xff]  ;;  %v39_v6 = vld [vmem:[#allocation2 + $0x18] sm:$0xff]  ;;  %s292_s29 = smov [#allocation5]  }
  0x15   :  { %v208_v5 = vpack.c.bf16 %v37_v3, %v36_v2  ;;  %v211_v7 = vpack.c.bf16 %v39_v6, %v38_v4  ;;  %v40_v8 = vld [vmem:[#allocation2 + $0x20] sm:$0xff]  ;;  %v41_v9 = vld [vmem:[#allocation2 + $0x28] sm:$0xff]  ;;  %v42_v11 = vld [vmem:[#allocation2 + $0x30] sm:$0xff]  ;;  %s145_s30 = sshll.u32 %s292_s29, 4  ;;  %s146_s30 = int_to_ptr.vmem [resolvable:$true] %s145_s30 }
  0x16   :  { %v214_v10 = vpack.c.bf16 %v41_v9, %v40_v8  ;;  %v43_v12 = vld [vmem:[#allocation2 + $0x38] sm:$0xff]  ;;  %v44_v14 = vld [vmem:[#allocation2 + $0x40] sm:$0xff]  ;;  %v45_v15 = vld [vmem:[#allocation2 + $0x48] sm:$0xff]  ;;  %s260_s4 = scalar_lea.vmem %s146_s30, 128  ;;  %p265_p9 = scmp.lt.s32.totalorder %s146_s30, %s146_s30 }
  0x17   :  { %209 = vmatpush3.bf16.msra.mxu0 %v208_v5  ;;  %v217_v13 = vpack.c.bf16 %v43_v12, %v42_v11  ;;  %v220_v16 = vpack.c.bf16 %v45_v15, %v44_v14  ;;  %v46_v17 = vld [vmem:[#allocation2 + $0x50] sm:$0xff]  ;;  %v47_v18 = vld [vmem:[#allocation2 + $0x58] sm:$0xff]  ;;  %v48_v20 = vld [vmem:[#allocation2 + $0x60] sm:$0xff]  ;;  %p261_p8 = scmp.ne.s32.totalorder %s146_s30, %s260_s4  ;;  %p266_p10 = scmp.lt.s32.totalorder %s260_s4, %s260_s4 }
  0x18   :  { %210 = vmatprep.subr.bf16.mxu0 %v289_v0  ;;  %v223_v19 = vpack.c.bf16 %v47_v18, %v46_v17  ;;  %v49_v21 = vld [vmem:[#allocation2 + $0x68] sm:$0xff]  ;;  %v50_v23 = vld [vmem:[#allocation2 + $0x70] sm:$0xff]  ;;  %v51_v24 = vld [vmem:[#allocation2 + $0x78] sm:$0xff] }
  0x19   :  { %v226_v22 = vpack.c.bf16 %v49_v21, %v48_v20  ;;  %v229_v25 = vpack.c.bf16 %v51_v24, %v50_v23  ;;  %v35_v26 = vld [vmem:[%s343_s0] sm:$0xff]  ;;  %p267_p11 = por %p266_p10, %p265_p9 }
  0x1a   :  { %v154_v28 = vld [vmem:[%s345_s2] ss:$0 sm:$0xff] }
  0x1b   :  { %212 = vmatpush3.bf16.msra.mxu0 %v211_v7  ;;  %p268_p12 = pnand %p267_p11, %p261_p8 }
  0x1c   :  { %213 = vmatprep.subr.bf16.mxu0 %v289_v0 }
  0x1f   :  { %215 = vmatpush3.bf16.msra.mxu0 %v214_v10 }
  0x20   :  { %216 = vmatprep.subr.bf16.mxu0 %v289_v0 }
  0x23   :  { %218 = vmatpush3.bf16.msra.mxu0 %v217_v13 }
  0x24   :  { %219 = vmatprep.subr.bf16.mxu0 %v289_v0 }
  0x27   :  { %221 = vmatpush3.bf16.msra.mxu0 %v220_v16 }
  0x28   :  { %222 = vmatprep.subr.bf16.mxu0 %v289_v0 }
  0x2b   :  { %224 = vmatpush3.bf16.msra.mxu0 %v223_v19 }
  0x2c   :  { %225 = vmatprep.subr.bf16.mxu0 %v289_v0 }
  0x2f   :  { %227 = vmatpush3.bf16.msra.mxu0 %v226_v22 }
  0x30   :  { %228 = vmatprep.subr.bf16.mxu0 %v289_v0 }
  0x33   :  { %230 = vmatpush3.bf16.msra.mxu0 %v229_v25 }
  0x36   :  { %205 = vmatmul.mubr.f32.vlgmr.msra.gmra.mrb[0].mxu0 %v35_v26 }
 0x109   :  { %v118_v27 = vpop.f32.mrb[0].mxu0 }
 0x10a   :  { %v206_v29 = vpop.f32.mrb[1].mxu0  ;;  %v135_v30 = vadd.f32 %v154_v28, %v118_v27 }
 0x10c   :  { %v136_v31 = vmul.f32 0.01, %v135_v30 }
 0x10e   :  { %v137_v32 = vmax.f32 %v135_v30, %v136_v31 }
 0x110   :  { %138 = vst [vmem:[#allocation5] sm:$0xff] %v137_v32 }
 0x111   :  { %271 = shalt.err (!%p268_p12)
}
 0x112   :  { %s272_s6 = scalar_lea.hbm %s346_s3, 128 }
 0x113   :  { %p273_p13 = scmp.ne.s32.totalorder %s346_s3, %s272_s6  ;;  %p276_p0 = scmp.lt.u32.totalorder %s272_s6, %s346_s3 }
 0x115   :  { %p278_p1 = pnand %p276_p0, %p273_p13 }
 0x117   :  { %281 = shalt.err (!%p278_p1)
}
 0x118   :  { %148 = dma.vmem_to_hbm [thread:$0]  %s146_s30, 128, %s346_s3, [#allocation4]  }
 0x119   :  { %284 = dma.done.wait [#allocation4], 128  }
 0x11a   :  { %285 = vsyncadd [#allocation4], 4294967168 }
 0x11b   :  { %152 = vsyncpa [#allocation3], 1 }
 0x11c   :  { %153 = vsyncpa [#allocation4], 1 }

</bundles_post_ra>
